<compile_context>
chip_gen: v7x
topology: tpu7x:2x2x1
jax: 0.10.0
libtpu: 0.0.40
codegen_flags: <defaults>
</compile_context>

<pallas_src>
import functools

import jax
import jax.numpy as jnp
from jax import lax
from jax.experimental import pallas as pl
from jax.experimental.pallas import tpu as pltpu

TAU = 0.01
RHO = 1.99
SIGMA = 1.0 / TAU / 72.0
CHECK_EVERY = 8          # convergence-check period (power of two)


def _seg_iota(shape, axis, seg):
    """Index within each length-`seg` segment along `axis` of a (rows, lanes) block."""
    idx = lax.broadcasted_iota(jnp.int32, shape, axis)
    if shape[axis] == seg:               # no packing along this axis
        return idx
    if seg & (seg - 1) == 0:             # power of two -> cheap bitwise-and
        return idx & (seg - 1)
    return idx % seg                     # general case (once per block, before the loop)


def _tgv_kernel(y_ref, out_ref,
                r0_ref, r1_ref, u0_ref, u1_ref, u2_ref, u3_ref, conv_ref,
                *, h, w, ths, niter, crit):
    """Full Chambolle–Pock loop on a lane/sublane packed (rows, lanes) slab."""
    rows, lanes = r0_ref.shape

    lambda1 = ths * 0.0                  # exact reference parameterization
    lambda2 = ths * 1.0
    scale_r = TAU * lambda1              # statically 0 for the reference forward()
    inv_one_plus_tau = 1.0 / (1.0 + TAU)
    crit2 = float(crit) * float(crit)

    # ---- per-segment boundary masks, built once per block (hoisted out of the loop).
    # They also zero every wrapped roll entry, so the lane/sublane plane packing never
    # leaks across planes.  (For very large blocks the compiler may spill these to VMEM
    # and reload via the non-binding vld slot — acceptable since the loop is VALU-bound.)
    row = _seg_iota((rows, lanes), 0, h)
    col = _seg_iota((rows, lanes), 1, w)
    m_h_lt = row < (h - 1)               # i <  H-1  (within each stacked plane)
    m_h_ge = row >= 1                    # i >= 1
    m_w_lt = col < (w - 1)               # j <  W-1  (within each packed plane)
    m_w_ge = col >= 1                    # j >= 1

    zero = jnp.zeros((rows, lanes), jnp.float32)

    # pltpu.roll follows jnp.roll semantics: out[i] = x[(i - shift) % n]; wrapped entries
    # (including cross-plane wraps) are always zeroed by the masks above.
    def up_h(a):      # out[i, :] = a[i+1, :]
        return pltpu.roll(a, shift=rows - 1, axis=0)

    def down_h(a):    # out[i, :] = a[i-1, :]
        return pltpu.roll(a, shift=1, axis=0)

    def left_w(a):    # out[:, j] = a[:, j+1]
        return pltpu.roll(a, shift=lanes - 1, axis=1)

    def right_w(a):   # out[:, j] = a[:, j-1]
        return pltpu.roll(a, shift=1, axis=1)

    # ---- TGV linear operators (intended deepinv nabla pair; epsilon2 as written) ----
    def nabla(x):
        d0 = jnp.where(m_h_lt, up_h(x) - x, 0.0)     # fwd diff along H
        d1 = jnp.where(m_w_lt, left_w(x) - x, 0.0)   # fwd diff along W
        return d0, d1

    def nabla_adjoint(p0, p1):
        return (jnp.where(m_h_ge, down_h(p0), 0.0) - jnp.where(m_h_lt, p0, 0.0)
                + jnp.where(m_w_ge, right_w(p1), 0.0) - jnp.where(m_w_lt, p1, 0.0))

    def epsilon(i0, i1):
        g0 = i0 - jnp.where(m_h_ge, down_h(i0), 0.0)
        g1 = jnp.where(m_w_ge, i0 - right_w(i0), 0.0)
        g2 = i1 - jnp.where(m_w_ge, right_w(i1), 0.0)
        g3 = jnp.where(m_h_lt, up_h(i1) - i1, 0.0)
        return g0, g1, g2, g3

    def epsilon_adjoint_u(g0, g1, g2, g3):
        # Specialised for the dual state u: u1 == 0 where col == 0 and u3 == 0 on the
        # last row of each plane (they only ever receive masked updates from epsilon and
        # elementwise scalings), so the generic m_w_ge / m_h_lt selects are redundant.
        i0 = (g0 - jnp.where(m_h_lt, up_h(g0), 0.0)
              + g1 - jnp.where(m_w_lt, left_w(g1), 0.0))
        i1 = (g2 - jnp.where(m_w_lt, left_w(g2), 0.0)
              - g3 + jnp.where(m_h_ge, down_h(g3), 0.0))
        return i0, i1

    # ---- state init: x2 (kept in out_ref) = y, r = 0, u = 0, not converged ----
    y = y_ref[0]
    out_ref[0] = y
    r0_ref[...] = zero
    r1_ref[...] = zero
    u0_ref[...] = zero
    u1_ref[...] = zero
    u2_ref[...] = zero
    u3_ref[...] = zero
    conv_ref[0] = jnp.int32(0)

    # loop-invariant data term of prox_tau_fx (hoisted; y is never re-read in the loop)
    y_scaled = (TAU * inv_one_plus_tau) * y

    def iteration(it, carry):
        @pl.when(conv_ref[0] == 0)          # real early exit once converged
        def _():
            x2 = out_ref[0]
            r0 = r0_ref[...]
            r1 = r1_ref[...]
            u0 = u0_ref[...]
            u1 = u1_ref[...]
            u2 = u2_ref[...]
            u3 = u3_ref[...]

            # tmp = tau * epsilon_adjoint(u2)
            t0, t1 = epsilon_adjoint_u(u0, u1, u2, u3)
            t0 = TAU * t0
            t1 = TAU * t1

            # x = prox_tau_fx(x2 - nabla_adjoint(tmp), y)
            x = (x2 - nabla_adjoint(t0, t1)) * inv_one_plus_tau + y_scaled

            # r = prox_tau_fr(r2 + tmp, lambda1); lambda1 == 0 -> exact identity limit,
            # so the shrink is specialised away at trace time.
            rr0 = r0 + t0
            rr1 = r1 + t1
            if scale_r == 0.0:
                rn0, rn1 = rr0, rr1
            else:
                nrm2_r = rr0 * rr0 + rr1 * rr1
                shrink = jnp.where(nrm2_r > scale_r * scale_r,
                                   1.0 - scale_r * lax.rsqrt(nrm2_r), 0.0)
                rn0 = rr0 * shrink
                rn1 = rr1 * shrink

            # u = prox_sigma_g_conj(u2 + sigma*epsilon(nabla(2x - x2) - (2r - r2)), lambda2)
            d0, d1 = nabla(2.0 * x - x2)
            e0 = d0 - (2.0 * rn0 - r0)
            e1 = d1 - (2.0 * rn1 - r1)
            g0, g1, g2, g3 = epsilon(e0, e1)
            v0 = u0 + SIGMA * g0
            v1 = u1 + SIGMA * g1
            v2 = u2 + SIGMA * g2
            v3 = u3 + SIGMA * g3
            nrm2_u = v0 * v0 + v1 * v1 + v2 * v2 + v3 * v3
            # EUP rsqrt; +1e-30 guards the ths==0 / all-zero corner (0*inf -> NaN)
            proj = jnp.minimum(lambda2 * lax.rsqrt(nrm2_u + 1e-30), 1.0)
            un0 = v0 * proj
            un1 = v1 * proj
            un2 = v2 * proj
            un3 = v3 * proj

            # over-relaxation
            x2n = x2 + RHO * (x - x2)
            out_ref[0] = x2n
            r0_ref[...] = r0 + RHO * (rn0 - r0)
            r1_ref[...] = r1 + RHO * (rn1 - r1)
            u0_ref[...] = u0 + RHO * (un0 - u0)
            u1_ref[...] = u1 + RHO * (un1 - u1)
            u2_ref[...] = u2 + RHO * (un2 - u2)
            u3_ref[...] = u3 + RHO * (un3 - u3)

            # amortized stopping test: only every CHECK_EVERY iterations (it >= 7 > 1),
            # compared in squares (no sqrt/div); per packed block, not batch-global.
            @pl.when((it & (CHECK_EVERY - 1)) == (CHECK_EVERY - 1))
            def _():
                diff = x2 - x2n
                num2 = jnp.sum(diff * diff)
                den = x2n + 1e-12
                den2 = jnp.sum(den * den)

                @pl.when(num2 < crit2 * den2)
                def _():
                    conv_ref[0] = jnp.int32(1)

        return carry

    lax.fori_loop(0, niter, iteration, 0)


def tgv_denoise(x, ths=0.1, *, ndim=2, niter=100, crit=1e-5, offset=None):
    """JAX/Pallas equivalent of TGVDenoiser(ndim=2, ths, niter, crit).forward(x)."""
    x = jnp.asarray(x, jnp.float32)
    # TODO(synk): complex-input path (stack real/imag as extra leading planes) not wired up.
    if offset is not None:
        x = x + jnp.asarray(offset, x.dtype)
    if ndim != 2:
        raise NotImplementedError("this Pallas port implements the ndim == 2 operators")

    ishape = x.shape
    y = x.reshape(-1, *ishape[-ndim:])                 # (N, H, W), N = prod(leading dims)
    n, h, w = y.shape

    # --- lane packing: gl independent planes side by side along the lane axis -------
    gl = max(1, 128 // w)
    lanes = gl * w
    n_pad = (-n) % gl
    if n_pad:
        y = jnp.concatenate([y, jnp.zeros((n_pad, h, w), y.dtype)], axis=0)
    ngl = (n + n_pad) // gl                            # number of lane-groups
    yl = y.reshape(ngl, gl, h, w).transpose(0, 2, 1, 3).reshape(ngl, h, lanes)

    # --- sublane stacking: gs lane-groups stacked along H per block ------------------
    # Size blocks so the serial niter loop is amortised, the ~10-12 buffer working set
    # stays far below v7x's 64 MiB VMEM, and >= 2 grid steps remain (when possible) so
    # v7x's two TensorCores both get work via the "parallel" grid axis.
    group_elems = h * lanes
    target_elems = 128 * 1024                          # ~128 vregs per state buffer
    max_elems = 256 * 1024                             # hard VMEM safety cap (~1 MiB/buf)
    gs = max(1, target_elems // group_elems)
    gs = min(gs, max(1, max_elems // group_elems))
    if ngl >= 2:
        gs = min(gs, max(1, ngl // 2))                 # keep ng >= 2 (megacore)
    gs = max(1, min(gs, ngl))
    g_pad = (-ngl) % gs
    if g_pad:
        yl = jnp.concatenate([yl, jnp.zeros((g_pad, h, lanes), yl.dtype)], axis=0)
    ng = (ngl + g_pad) // gs
    rows = gs * h
    yp = yl.reshape(ng, rows, lanes)

    # TODO(synk): very large single planes (h*lanes > max_elems) would need H-tiling with
    # halo exchange; currently such planes run as one oversized block.
    block_bytes = rows * lanes * 4
    # ~10 resident (rows, lanes) f32 buffers (y + out double-buffered, 6 state scratch)
    # plus headroom for iteration temporaries / spills and Mosaic internal scratch.
    vmem_need = 16 * block_bytes + (2 << 20)
    vmem_limit = int(min(48 << 20, max(16 << 20, vmem_need)))   # <=48 MiB: v7x headroom

    kernel = functools.partial(_tgv_kernel, h=int(h), w=int(w), ths=float(ths),
                               niter=int(niter), crit=float(crit))

    grid_spec = pltpu.PrefetchScalarGridSpec(
        num_scalar_prefetch=0,
        grid=(ng,),
        in_specs=[pl.BlockSpec((1, rows, lanes), lambda i: (i, 0, 0))],   # packed y
        out_specs=pl.BlockSpec((1, rows, lanes), lambda i: (i, 0, 0)),    # x2 lives here
        scratch_shapes=(
            [pltpu.VMEM((rows, lanes), jnp.float32) for _ in range(6)]    # r0,r1,u0..u3
            + [pltpu.SMEM((1,), jnp.int32)]                               # converged flag
        ),
    )

    elems = ng * rows * lanes
    out = pl.pallas_call(
        kernel,
        out_shape=jax.ShapeDtypeStruct((ng, rows, lanes), jnp.float32),
        grid_spec=grid_spec,
        compiler_params=pltpu.CompilerParams(
            dimension_semantics=("parallel",),
            vmem_limit_bytes=vmem_limit,
        ),
        cost_estimate=pl.CostEstimate(
            flops=int(niter) * 80 * elems,
            transcendentals=int(niter) * elems,
            bytes_accessed=int(3 * elems * 4),
        ),
    )(yp)

    # --- unpack sublane stacking, then lanes, back to (N, H, W) and original shape ---
    out = out.reshape(ngl + g_pad, h, lanes)[:ngl]
    out = out.reshape(ngl, h, gl, w).transpose(0, 2, 1, 3).reshape(ngl * gl, h, w)
    out = out[:n]
    return out.reshape(ishape)


if __name__ == "__main__":
    key = jax.random.PRNGKey(0)
    x = jax.random.normal(key, (2, 4, 16, 16), dtype=jnp.float32)  # NCHW -> (8,16,16) inside

    out = tgv_denoise(x, ths=0.1, ndim=2, niter=100, crit=1e-5)
    out = jax.block_until_ready(out)

    assert out.shape == x.shape
    assert out.dtype == jnp.float32
    assert bool(jnp.all(jnp.isfinite(out)))   # NaN artifact of the reference is fixed
    print("KERNEL_OK")
</pallas_src>

<mosaic_0001>
module attributes {stable_mosaic.version = 11 : i64} {
  func.func @_tgv_kernel(%arg0: i32, %arg1: memref<1x16x128xf32, #tpu.memory_space<vmem>>, %arg2: memref<1x16x128xf32, #tpu.memory_space<vmem>>, %arg3: memref<16x128xf32, #tpu.memory_space<vmem>>, %arg4: memref<16x128xf32, #tpu.memory_space<vmem>>, %arg5: memref<16x128xf32, #tpu.memory_space<vmem>>, %arg6: memref<16x128xf32, #tpu.memory_space<vmem>>, %arg7: memref<16x128xf32, #tpu.memory_space<vmem>>, %arg8: memref<16x128xf32, #tpu.memory_space<vmem>>, %arg9: memref<1xi32, #tpu.memory_space<smem>>) attributes {dimension_semantics = [#tpu.dimension_semantics<parallel>], iteration_bounds = array<i64: 1>, scalar_prefetch = 0 : i64, scratch_operands = 7 : i64, tpu.core_type = #tpu.core_type<tc>, window_params = [{transform_indices = @transform_0, window_bounds = array<i64: 1, 16, 128>}, {transform_indices = @transform_1, window_bounds = array<i64: 1, 16, 128>}]} {
    %0 = tpu.iota {dimensions = array<i32: 0>} : vector<16x128xi32>
    %1 = tpu.iota {dimensions = array<i32: 1>} : vector<16x128xi32>
    %c15_i32 = arith.constant 15 : i32
    %2 = vector.broadcast %c15_i32 : i32 to vector<16x128xi32>
    %3 = arith.andi %1, %2 : vector<16x128xi32>
    %c15_i32_0 = arith.constant 15 : i32
    %4 = vector.broadcast %c15_i32_0 : i32 to vector<16x128xi32>
    %5 = arith.cmpi slt, %0, %4 : vector<16x128xi32>
    %c1_i32 = arith.constant 1 : i32
    %6 = vector.broadcast %c1_i32 : i32 to vector<16x128xi32>
    %7 = arith.cmpi sge, %0, %6 : vector<16x128xi32>
    %c15_i32_1 = arith.constant 15 : i32
    %8 = vector.broadcast %c15_i32_1 : i32 to vector<16x128xi32>
    %9 = arith.cmpi slt, %3, %8 : vector<16x128xi32>
    %c1_i32_2 = arith.constant 1 : i32
    %10 = vector.broadcast %c1_i32_2 : i32 to vector<16x128xi32>
    %11 = arith.cmpi sge, %3, %10 : vector<16x128xi32>
    %cst = arith.constant 0.000000e+00 : f32
    %12 = vector.broadcast %cst : f32 to vector<16x128xf32>
    %c0 = arith.constant 0 : index
    %c0_3 = arith.constant 0 : index
    %c0_4 = arith.constant 0 : index
    %13 = vector.load %arg1[%c0, %c0_3, %c0_4] : memref<1x16x128xf32, #tpu.memory_space<vmem>>, vector<1x16x128xf32>
    %14 = vector.shape_cast %13 : vector<1x16x128xf32> to vector<16x128xf32>
    %c0_5 = arith.constant 0 : index
    %c0_6 = arith.constant 0 : index
    %c0_7 = arith.constant 0 : index
    %15 = vector.load %arg2[%c0_5, %c0_6, %c0_7] : memref<1x16x128xf32, #tpu.memory_space<vmem>>, vector<1x16x128xf32>
    %16 = vector.shape_cast %15 : vector<1x16x128xf32> to vector<16x128xf32>
    %17 = vector.shape_cast %14 : vector<16x128xf32> to vector<1x16x128xf32>
    tpu.vector_store %arg2[%c0_5, %c0_6, %c0_7], %17 {strides = array<i32>} : memref<1x16x128xf32, #tpu.memory_space<vmem>>, vector<1x16x128xf32>,
    %c0_8 = arith.constant 0 : index
    %c0_9 = arith.constant 0 : index
    %18 = vector.load %arg3[%c0_8, %c0_9] : memref<16x128xf32, #tpu.memory_space<vmem>>, vector<16x128xf32>
    tpu.vector_store %arg3[%c0_8, %c0_9], %12 {strides = array<i32>} : memref<16x128xf32, #tpu.memory_space<vmem>>, vector<16x128xf32>,
    %c0_10 = arith.constant 0 : index
    %c0_11 = arith.constant 0 : index
    %19 = vector.load %arg4[%c0_10, %c0_11] : memref<16x128xf32, #tpu.memory_space<vmem>>, vector<16x128xf32>
    tpu.vector_store %arg4[%c0_10, %c0_11], %12 {strides = array<i32>} : memref<16x128xf32, #tpu.memory_space<vmem>>, vector<16x128xf32>,
    %c0_12 = arith.constant 0 : index
    %c0_13 = arith.constant 0 : index
    %20 = vector.load %arg5[%c0_12, %c0_13] : memref<16x128xf32, #tpu.memory_space<vmem>>, vector<16x128xf32>
    tpu.vector_store %arg5[%c0_12, %c0_13], %12 {strides = array<i32>} : memref<16x128xf32, #tpu.memory_space<vmem>>, vector<16x128xf32>,
    %c0_14 = arith.constant 0 : index
    %c0_15 = arith.constant 0 : index
    %21 = vector.load %arg6[%c0_14, %c0_15] : memref<16x128xf32, #tpu.memory_space<vmem>>, vector<16x128xf32>
    tpu.vector_store %arg6[%c0_14, %c0_15], %12 {strides = array<i32>} : memref<16x128xf32, #tpu.memory_space<vmem>>, vector<16x128xf32>,
    %c0_16 = arith.constant 0 : index
    %c0_17 = arith.constant 0 : index
    %22 = vector.load %arg7[%c0_16, %c0_17] : memref<16x128xf32, #tpu.memory_space<vmem>>, vector<16x128xf32>
    tpu.vector_store %arg7[%c0_16, %c0_17], %12 {strides = array<i32>} : memref<16x128xf32, #tpu.memory_space<vmem>>, vector<16x128xf32>,
    %c0_18 = arith.constant 0 : index
    %c0_19 = arith.constant 0 : index
    %23 = vector.load %arg8[%c0_18, %c0_19] : memref<16x128xf32, #tpu.memory_space<vmem>>, vector<16x128xf32>
    tpu.vector_store %arg8[%c0_18, %c0_19], %12 {strides = array<i32>} : memref<16x128xf32, #tpu.memory_space<vmem>>, vector<16x128xf32>,
    %c0_i32 = arith.constant 0 : i32
    %c0_20 = arith.constant 0 : index
    %24 = memref.load %arg9[%c0_20] : memref<1xi32, #tpu.memory_space<smem>>
    memref.store %c0_i32, %arg9[%c0_20] : memref<1xi32, #tpu.memory_space<smem>>
    %cst_21 = arith.constant 9.900990e-03 : f32
    %25 = vector.broadcast %cst_21 : f32 to vector<16x128xf32>
    %26 = arith.mulf %25, %14 : vector<16x128xf32>
    %c0_i32_22 = arith.constant 0 : i32
    %c100_i32 = arith.constant 100 : i32
    %27 = arith.addi %c0_i32_22, %c100_i32 : i32
    %c1_i32_23 = arith.constant 1 : i32
    scf.for %arg10 = %c0_i32_22 to %27 step %c1_i32_23  : i32 {
      %c0_25 = arith.constant 0 : index
      %28 = memref.load %arg9[%c0_25] : memref<1xi32, #tpu.memory_space<smem>>
      %c0_i32_26 = arith.constant 0 : i32
      %29 = arith.cmpi eq, %28, %c0_i32_26 : i32
      %30 = arith.extui %29 : i1 to i32
      %c0_i32_27 = arith.constant 0 : i32
      %31 = arith.cmpi ne, %30, %c0_i32_27 : i32
      scf.if %31 {
        %c0_28 = arith.constant 0 : index
        %c0_29 = arith.constant 0 : index
        %c0_30 = arith.constant 0 : index
        %32 = vector.load %arg2[%c0_28, %c0_29, %c0_30] : memref<1x16x128xf32, #tpu.memory_space<vmem>>, vector<1x16x128xf32>
        %33 = vector.shape_cast %32 : vector<1x16x128xf32> to vector<16x128xf32>
        %c0_31 = arith.constant 0 : index
        %c0_32 = arith.constant 0 : index
        %34 = vector.load %arg3[%c0_31, %c0_32] : memref<16x128xf32, #tpu.memory_space<vmem>>, vector<16x128xf32>
        %c0_33 = arith.constant 0 : index
        %c0_34 = arith.constant 0 : index
        %35 = vector.load %arg4[%c0_33, %c0_34] : memref<16x128xf32, #tpu.memory_space<vmem>>, vector<16x128xf32>
        %c0_35 = arith.constant 0 : index
        %c0_36 = arith.constant 0 : index
        %36 = vector.load %arg5[%c0_35, %c0_36] : memref<16x128xf32, #tpu.memory_space<vmem>>, vector<16x128xf32>
        %c0_37 = arith.constant 0 : index
        %c0_38 = arith.constant 0 : index
        %37 = vector.load %arg6[%c0_37, %c0_38] : memref<16x128xf32, #tpu.memory_space<vmem>>, vector<16x128xf32>
        %c0_39 = arith.constant 0 : index
        %c0_40 = arith.constant 0 : index
        %38 = vector.load %arg7[%c0_39, %c0_40] : memref<16x128xf32, #tpu.memory_space<vmem>>, vector<16x128xf32>
        %c0_41 = arith.constant 0 : index
        %c0_42 = arith.constant 0 : index
        %39 = vector.load %arg8[%c0_41, %c0_42] : memref<16x128xf32, #tpu.memory_space<vmem>>, vector<16x128xf32>
        %c15_i32_43 = arith.constant 15 : i32
        %40 = tpu.dynamic_rotate %36 by %c15_i32_43 dim 0 : vector<16x128xf32>, i32 -> vector<16x128xf32>
        %cst_44 = arith.constant 0.000000e+00 : f32
        %41 = vector.broadcast %cst_44 : f32 to vector<16x128xf32>
        %42 = arith.select %5, %40, %41 : vector<16x128xi1>, vector<16x128xf32>
        %43 = arith.subf %36, %42 : vector<16x128xf32>
        %44 = arith.addf %43, %37 : vector<16x128xf32>
        %c127_i32 = arith.constant 127 : i32
        %45 = tpu.dynamic_rotate %37 by %c127_i32 dim 1 : vector<16x128xf32>, i32 -> vector<16x128xf32>
        %cst_45 = arith.constant 0.000000e+00 : f32
        %46 = vector.broadcast %cst_45 : f32 to vector<16x128xf32>
        %47 = arith.select %9, %45, %46 : vector<16x128xi1>, vector<16x128xf32>
        %48 = arith.subf %44, %47 : vector<16x128xf32>
        %c127_i32_46 = arith.constant 127 : i32
        %49 = tpu.dynamic_rotate %38 by %c127_i32_46 dim 1 : vector<16x128xf32>, i32 -> vector<16x128xf32>
        %cst_47 = arith.constant 0.000000e+00 : f32
        %50 = vector.broadcast %cst_47 : f32 to vector<16x128xf32>
        %51 = arith.select %9, %49, %50 : vector<16x128xi1>, vector<16x128xf32>
        %52 = arith.subf %38, %51 : vector<16x128xf32>
        %53 = arith.subf %52, %39 : vector<16x128xf32>
        %c1_i32_48 = arith.constant 1 : i32
        %54 = tpu.dynamic_rotate %39 by %c1_i32_48 dim 0 : vector<16x128xf32>, i32 -> vector<16x128xf32>
        %cst_49 = arith.constant 0.000000e+00 : f32
        %55 = vector.broadcast %cst_49 : f32 to vector<16x128xf32>
        %56 = arith.select %7, %54, %55 : vector<16x128xi1>, vector<16x128xf32>
        %57 = arith.addf %53, %56 : vector<16x128xf32>
        %cst_50 = arith.constant 0.00999999977 : f32
        %58 = vector.broadcast %cst_50 : f32 to vector<16x128xf32>
        %59 = arith.mulf %58, %48 : vector<16x128xf32>
        %cst_51 = arith.constant 0.00999999977 : f32
        %60 = vector.broadcast %cst_51 : f32 to vector<16x128xf32>
        %61 = arith.mulf %60, %57 : vector<16x128xf32>
        %c1_i32_52 = arith.constant 1 : i32
        %62 = tpu.dynamic_rotate %59 by %c1_i32_52 dim 0 : vector<16x128xf32>, i32 -> vector<16x128xf32>
        %cst_53 = arith.constant 0.000000e+00 : f32
        %63 = vector.broadcast %cst_53 : f32 to vector<16x128xf32>
        %64 = arith.select %7, %62, %63 : vector<16x128xi1>, vector<16x128xf32>
        %cst_54 = arith.constant 0.000000e+00 : f32
        %65 = vector.broadcast %cst_54 : f32 to vector<16x128xf32>
        %66 = arith.select %5, %59, %65 : vector<16x128xi1>, vector<16x128xf32>
        %67 = arith.subf %64, %66 : vector<16x128xf32>
        %c1_i32_55 = arith.constant 1 : i32
        %68 = tpu.dynamic_rotate %61 by %c1_i32_55 dim 1 : vector<16x128xf32>, i32 -> vector<16x128xf32>
        %cst_56 = arith.constant 0.000000e+00 : f32
        %69 = vector.broadcast %cst_56 : f32 to vector<16x128xf32>
        %70 = arith.select %11, %68, %69 : vector<16x128xi1>, vector<16x128xf32>
        %71 = arith.addf %67, %70 : vector<16x128xf32>
        %cst_57 = arith.constant 0.000000e+00 : f32
        %72 = vector.broadcast %cst_57 : f32 to vector<16x128xf32>
        %73 = arith.select %9, %61, %72 : vector<16x128xi1>, vector<16x128xf32>
        %74 = arith.subf %71, %73 : vector<16x128xf32>
        %75 = arith.subf %33, %74 : vector<16x128xf32>
        %cst_58 = arith.constant 9.900990e-01 : f32
        %76 = vector.broadcast %cst_58 : f32 to vector<16x128xf32>
        %77 = arith.mulf %75, %76 : vector<16x128xf32>
        %78 = arith.addf %77, %26 : vector<16x128xf32>
        %79 = arith.addf %34, %59 : vector<16x128xf32>
        %80 = arith.addf %35, %61 : vector<16x128xf32>
        %cst_59 = arith.constant 2.000000e+00 : f32
        %81 = vector.broadcast %cst_59 : f32 to vector<16x128xf32>
        %82 = arith.mulf %81, %78 : vector<16x128xf32>
        %83 = arith.subf %82, %33 : vector<16x128xf32>
        %c15_i32_60 = arith.constant 15 : i32
        %84 = tpu.dynamic_rotate %83 by %c15_i32_60 dim 0 : vector<16x128xf32>, i32 -> vector<16x128xf32>
        %85 = arith.subf %84, %83 : vector<16x128xf32>
        %cst_61 = arith.constant 0.000000e+00 : f32
        %86 = vector.broadcast %cst_61 : f32 to vector<16x128xf32>
        %87 = arith.select %5, %85, %86 : vector<16x128xi1>, vector<16x128xf32>
        %c127_i32_62 = arith.constant 127 : i32
        %88 = tpu.dynamic_rotate %83 by %c127_i32_62 dim 1 : vector<16x128xf32>, i32 -> vector<16x128xf32>
        %89 = arith.subf %88, %83 : vector<16x128xf32>
        %cst_63 = arith.constant 0.000000e+00 : f32
        %90 = vector.broadcast %cst_63 : f32 to vector<16x128xf32>
        %91 = arith.select %9, %89, %90 : vector<16x128xi1>, vector<16x128xf32>
        %cst_64 = arith.constant 2.000000e+00 : f32
        %92 = vector.broadcast %cst_64 : f32 to vector<16x128xf32>
        %93 = arith.mulf %92, %79 : vector<16x128xf32>
        %94 = arith.subf %93, %34 : vector<16x128xf32>
        %95 = arith.subf %87, %94 : vector<16x128xf32>
        %cst_65 = arith.constant 2.000000e+00 : f32
        %96 = vector.broadcast %cst_65 : f32 to vector<16x128xf32>
        %97 = arith.mulf %96, %80 : vector<16x128xf32>
        %98 = arith.subf %97, %35 : vector<16x128xf32>
        %99 = arith.subf %91, %98 : vector<16x128xf32>
        %c1_i32_66 = arith.constant 1 : i32
        %100 = tpu.dynamic_rotate %95 by %c1_i32_66 dim 0 : vector<16x128xf32>, i32 -> vector<16x128xf32>
        %cst_67 = arith.constant 0.000000e+00 : f32
        %101 = vector.broadcast %cst_67 : f32 to vector<16x128xf32>
        %102 = arith.select %7, %100, %101 : vector<16x128xi1>, vector<16x128xf32>
        %103 = arith.subf %95, %102 : vector<16x128xf32>
        %c1_i32_68 = arith.constant 1 : i32
        %104 = tpu.dynamic_rotate %95 by %c1_i32_68 dim 1 : vector<16x128xf32>, i32 -> vector<16x128xf32>
        %105 = arith.subf %95, %104 : vector<16x128xf32>
        %cst_69 = arith.constant 0.000000e+00 : f32
        %106 = vector.broadcast %cst_69 : f32 to vector<16x128xf32>
        %107 = arith.select %11, %105, %106 : vector<16x128xi1>, vector<16x128xf32>
        %c1_i32_70 = arith.constant 1 : i32
        %108 = tpu.dynamic_rotate %99 by %c1_i32_70 dim 1 : vector<16x128xf32>, i32 -> vector<16x128xf32>
        %cst_71 = arith.constant 0.000000e+00 : f32
        %109 = vector.broadcast %cst_71 : f32 to vector<16x128xf32>
        %110 = arith.select %11, %108, %109 : vector<16x128xi1>, vector<16x128xf32>
        %111 = arith.subf %99, %110 : vector<16x128xf32>
        %c15_i32_72 = arith.constant 15 : i32
        %112 = tpu.dynamic_rotate %99 by %c15_i32_72 dim 0 : vector<16x128xf32>, i32 -> vector<16x128xf32>
        %113 = arith.subf %112, %99 : vector<16x128xf32>
        %cst_73 = arith.constant 0.000000e+00 : f32
        %114 = vector.broadcast %cst_73 : f32 to vector<16x128xf32>
        %115 = arith.select %5, %113, %114 : vector<16x128xi1>, vector<16x128xf32>
        %cst_74 = arith.constant 1.38888884 : f32
        %116 = vector.broadcast %cst_74 : f32 to vector<16x128xf32>
        %117 = arith.mulf %116, %103 : vector<16x128xf32>
        %118 = arith.addf %36, %117 : vector<16x128xf32>
        %cst_75 = arith.constant 1.38888884 : f32
        %119 = vector.broadcast %cst_75 : f32 to vector<16x128xf32>
        %120 = arith.mulf %119, %107 : vector<16x128xf32>
        %121 = arith.addf %37, %120 : vector<16x128xf32>
        %cst_76 = arith.constant 1.38888884 : f32
        %122 = vector.broadcast %cst_76 : f32 to vector<16x128xf32>
        %123 = arith.mulf %122, %111 : vector<16x128xf32>
        %124 = arith.addf %38, %123 : vector<16x128xf32>
        %cst_77 = arith.constant 1.38888884 : f32
        %125 = vector.broadcast %cst_77 : f32 to vector<16x128xf32>
        %126 = arith.mulf %125, %115 : vector<16x128xf32>
        %127 = arith.addf %39, %126 : vector<16x128xf32>
        %128 = arith.mulf %118, %118 : vector<16x128xf32>
        %129 = arith.mulf %121, %121 : vector<16x128xf32>
        %130 = arith.addf %128, %129 : vector<16x128xf32>
        %131 = arith.mulf %124, %124 : vector<16x128xf32>
        %132 = arith.addf %130, %131 : vector<16x128xf32>
        %133 = arith.mulf %127, %127 : vector<16x128xf32>
        %134 = arith.addf %132, %133 : vector<16x128xf32>
        %cst_78 = arith.constant 1.000000e-30 : f32
        %135 = vector.broadcast %cst_78 : f32 to vector<16x128xf32>
        %136 = arith.addf %134, %135 : vector<16x128xf32>
        %137 = math.rsqrt %136 : vector<16x128xf32>
        %cst_79 = arith.constant 1.000000e-01 : f32
        %138 = vector.broadcast %cst_79 : f32 to vector<16x128xf32>
        %139 = arith.mulf %138, %137 : vector<16x128xf32>
        %cst_80 = arith.constant 1.000000e+00 : f32
        %140 = vector.broadcast %cst_80 : f32 to vector<16x128xf32>
        %141 = arith.minimumf %139, %140 : vector<16x128xf32>
        %142 = arith.mulf %118, %141 : vector<16x128xf32>
        %143 = arith.mulf %121, %141 : vector<16x128xf32>
        %144 = arith.mulf %124, %141 : vector<16x128xf32>
        %145 = arith.mulf %127, %141 : vector<16x128xf32>
        %146 = arith.subf %78, %33 : vector<16x128xf32>
        %cst_81 = arith.constant 1.990000e+00 : f32
        %147 = vector.broadcast %cst_81 : f32 to vector<16x128xf32>
        %148 = arith.mulf %147, %146 : vector<16x128xf32>
        %149 = arith.addf %33, %148 : vector<16x128xf32>
        %c0_82 = arith.constant 0 : index
        %c0_83 = arith.constant 0 : index
        %c0_84 = arith.constant 0 : index
        %150 = vector.load %arg2[%c0_82, %c0_83, %c0_84] : memref<1x16x128xf32, #tpu.memory_space<vmem>>, vector<1x16x128xf32>
        %151 = vector.shape_cast %150 : vector<1x16x128xf32> to vector<16x128xf32>
        %152 = vector.shape_cast %149 : vector<16x128xf32> to vector<1x16x128xf32>
        tpu.vector_store %arg2[%c0_82, %c0_83, %c0_84], %152 {strides = array<i32>} : memref<1x16x128xf32, #tpu.memory_space<vmem>>, vector<1x16x128xf32>,
        %153 = arith.subf %79, %34 : vector<16x128xf32>
        %cst_85 = arith.constant 1.990000e+00 : f32
        %154 = vector.broadcast %cst_85 : f32 to vector<16x128xf32>
        %155 = arith.mulf %154, %153 : vector<16x128xf32>
        %156 = arith.addf %34, %155 : vector<16x128xf32>
        %c0_86 = arith.constant 0 : index
        %c0_87 = arith.constant 0 : index
        %157 = vector.load %arg3[%c0_86, %c0_87] : memref<16x128xf32, #tpu.memory_space<vmem>>, vector<16x128xf32>
        tpu.vector_store %arg3[%c0_86, %c0_87], %156 {strides = array<i32>} : memref<16x128xf32, #tpu.memory_space<vmem>>, vector<16x128xf32>,
        %158 = arith.subf %80, %35 : vector<16x128xf32>
        %cst_88 = arith.constant 1.990000e+00 : f32
        %159 = vector.broadcast %cst_88 : f32 to vector<16x128xf32>
        %160 = arith.mulf %159, %158 : vector<16x128xf32>
        %161 = arith.addf %35, %160 : vector<16x128xf32>
        %c0_89 = arith.constant 0 : index
        %c0_90 = arith.constant 0 : index
        %162 = vector.load %arg4[%c0_89, %c0_90] : memref<16x128xf32, #tpu.memory_space<vmem>>, vector<16x128xf32>
        tpu.vector_store %arg4[%c0_89, %c0_90], %161 {strides = array<i32>} : memref<16x128xf32, #tpu.memory_space<vmem>>, vector<16x128xf32>,
        %163 = arith.subf %142, %36 : vector<16x128xf32>
        %cst_91 = arith.constant 1.990000e+00 : f32
        %164 = vector.broadcast %cst_91 : f32 to vector<16x128xf32>
        %165 = arith.mulf %164, %163 : vector<16x128xf32>
        %166 = arith.addf %36, %165 : vector<16x128xf32>
        %c0_92 = arith.constant 0 : index
        %c0_93 = arith.constant 0 : index
        %167 = vector.load %arg5[%c0_92, %c0_93] : memref<16x128xf32, #tpu.memory_space<vmem>>, vector<16x128xf32>
        tpu.vector_store %arg5[%c0_92, %c0_93], %166 {strides = array<i32>} : memref<16x128xf32, #tpu.memory_space<vmem>>, vector<16x128xf32>,
        %168 = arith.subf %143, %37 : vector<16x128xf32>
        %cst_94 = arith.constant 1.990000e+00 : f32
        %169 = vector.broadcast %cst_94 : f32 to vector<16x128xf32>
        %170 = arith.mulf %169, %168 : vector<16x128xf32>
        %171 = arith.addf %37, %170 : vector<16x128xf32>
        %c0_95 = arith.constant 0 : index
        %c0_96 = arith.constant 0 : index
        %172 = vector.load %arg6[%c0_95, %c0_96] : memref<16x128xf32, #tpu.memory_space<vmem>>, vector<16x128xf32>
        tpu.vector_store %arg6[%c0_95, %c0_96], %171 {strides = array<i32>} : memref<16x128xf32, #tpu.memory_space<vmem>>, vector<16x128xf32>,
        %173 = arith.subf %144, %38 : vector<16x128xf32>
        %cst_97 = arith.constant 1.990000e+00 : f32
        %174 = vector.broadcast %cst_97 : f32 to vector<16x128xf32>
        %175 = arith.mulf %174, %173 : vector<16x128xf32>
        %176 = arith.addf %38, %175 : vector<16x128xf32>
        %c0_98 = arith.constant 0 : index
        %c0_99 = arith.constant 0 : index
        %177 = vector.load %arg7[%c0_98, %c0_99] : memref<16x128xf32, #tpu.memory_space<vmem>>, vector<16x128xf32>
        tpu.vector_store %arg7[%c0_98, %c0_99], %176 {strides = array<i32>} : memref<16x128xf32, #tpu.memory_space<vmem>>, vector<16x128xf32>,
        %178 = arith.subf %145, %39 : vector<16x128xf32>
        %cst_100 = arith.constant 1.990000e+00 : f32
        %179 = vector.broadcast %cst_100 : f32 to vector<16x128xf32>
        %180 = arith.mulf %179, %178 : vector<16x128xf32>
        %181 = arith.addf %39, %180 : vector<16x128xf32>
        %c0_101 = arith.constant 0 : index
        %c0_102 = arith.constant 0 : index
        %182 = vector.load %arg8[%c0_101, %c0_102] : memref<16x128xf32, #tpu.memory_space<vmem>>, vector<16x128xf32>
        tpu.vector_store %arg8[%c0_101, %c0_102], %181 {strides = array<i32>} : memref<16x128xf32, #tpu.memory_space<vmem>>, vector<16x128xf32>,
        %c7_i32 = arith.constant 7 : i32
        %183 = arith.andi %arg10, %c7_i32 : i32
        %c7_i32_103 = arith.constant 7 : i32
        %184 = arith.cmpi eq, %183, %c7_i32_103 : i32
        %185 = arith.extui %184 : i1 to i32
        %c0_i32_104 = arith.constant 0 : i32
        %186 = arith.cmpi ne, %185, %c0_i32_104 : i32
        scf.if %186 {
          %187 = arith.subf %33, %149 : vector<16x128xf32>
          %188 = arith.mulf %187, %187 : vector<16x128xf32>
          %189 = vector.shape_cast %188 : vector<16x128xf32> to vector<1x16x128xf32>
          %cst_105 = arith.constant dense<0.000000e+00> : vector<1xf32>
          %190 = vector.multi_reduction <add>, %189, %cst_105 [1, 2] : vector<1x16x128xf32> to vector<1xf32>
          %191 = vector.shape_cast %190 : vector<1xf32> to vector<1x1x1xf32>
          %192 = vector.extract %191[0, 0, 0] : f32 from vector<1x1x1xf32>
          %cst_106 = arith.constant 9.99999996E-13 : f32
          %193 = vector.broadcast %cst_106 : f32 to vector<16x128xf32>
          %194 = arith.addf %149, %193 : vector<16x128xf32>
          %195 = arith.mulf %194, %194 : vector<16x128xf32>
          %196 = vector.shape_cast %195 : vector<16x128xf32> to vector<1x16x128xf32>
          %cst_107 = arith.constant dense<0.000000e+00> : vector<1xf32>
          %197 = vector.multi_reduction <add>, %196, %cst_107 [1, 2] : vector<1x16x128xf32> to vector<1xf32>
          %198 = vector.shape_cast %197 : vector<1xf32> to vector<1x1x1xf32>
          %199 = vector.extract %198[0, 0, 0] : f32 from vector<1x1x1xf32>
          %cst_108 = arith.constant 1.000000e-10 : f32
          %200 = arith.mulf %cst_108, %199 : f32
          %201 = arith.cmpf olt, %192, %200 : f32
          %202 = arith.extui %201 : i1 to i32
          %c0_i32_109 = arith.constant 0 : i32
          %203 = arith.cmpi ne, %202, %c0_i32_109 : i32
          scf.if %203 {
            %c1_i32_110 = arith.constant 1 : i32
            %c0_111 = arith.constant 0 : index
            %204 = memref.load %arg9[%c0_111] : memref<1xi32, #tpu.memory_space<smem>>
            memref.store %c1_i32_110, %arg9[%c0_111] : memref<1xi32, #tpu.memory_space<smem>>
          } else {
          }
        } else {
        }
      } else {
      }
    }
    %c100_i32_24 = arith.constant 100 : i32
    return
  }
  func.func @transform_0(%arg0: i32) -> (i32, i32, i32) {
    %c0_i32 = arith.constant 0 : i32
    %c0_i32_0 = arith.constant 0 : i32
    %c0_i32_1 = arith.constant 0 : i32
    return %arg0, %c0_i32, %c0_i32_0 : i32, i32, i32
  }
  func.func @transform_1(%arg0: i32) -> (i32, i32, i32) {
    %c0_i32 = arith.constant 0 : i32
    %c0_i32_0 = arith.constant 0 : i32
    %c0_i32_1 = arith.constant 0 : i32
    return %arg0, %c0_i32, %c0_i32_0 : i32, i32, i32
  }
}

</mosaic_0001>

<bundles_post_ra>
// kernel: tpu_custom_call.1
= control target key start
LH: loop header
LB: loop body
LE: loop exit
PB: predicated region body
PF: predicated region fallthrough
CT: control target
= control target key end

     0   :  { %6 = vsyncpa [#allocation10], 0  ;;  %s742_s0 = inlined_call_operand.hbm [shape: f32[1,16,128], index: 0, kind: input, shape index: {}]   ;;  %s743_s1 = inlined_call_operand.hbm [shape: f32[1,16,128], index: 1, kind: output, shape index: {}]  }
   0x1   :  { %7 = vsyncpa [#allocation11], 0  ;;  %s465_s6 = smov [#allocation9]   ;;  %s409_s10 = scalar_lea.hbm %s742_s0, 256 }
   0x2   :  { %s13_s7 = sshll.u32 %s465_s6, 4  ;;  %p410_p0 = scmp.ne.s32.totalorder %s742_s0, %s409_s10  ;;  %s14_s7 = int_to_ptr.vmem [resolvable:$true] %s13_s7 }
   0x3   :  { %p413_p1 = scmp.lt.u32.totalorder %s409_s10, %s742_s0 }
   0x5   :  { %p415_p2 = pnand %p413_p1, %p410_p0 }
   0x7   :  { %418 = shalt.err (!%p415_p2)
}
   0x8   :  { %s419_s15 = scalar_lea.vmem %s14_s7, 256  ;;  %p424_p4 = scmp.lt.s32.totalorder %s14_s7, %s14_s7 }
   0x9   :  { %p420_p3 = scmp.ne.s32.totalorder %s14_s7, %s419_s15  ;;  %p425_p5 = scmp.lt.s32.totalorder %s419_s15, %s419_s15 }
   0xb   :  { %p426_p6 = por %p425_p5, %p424_p4 }
   0xd   :  { %p427_p7 = pnand %p426_p6, %p420_p3 }
   0xf   :  { %430 = shalt.err (!%p427_p7)
}
  0x10   :  { %s466_s16 = smov 128   ;;  %s467_s17 = smov 8  }
  0x11   :  { %19 = dma.hbm_to_vmem [thread:$0]  %s742_s0, 256, %s14_s7, [#allocation10], %s466_s16, %s466_s16, %s467_s17  }
  0x12   :  { %457 = dma.done.wait [#allocation10], 256  }
  0x13   :  { %458 = vsyncadd [#allocation10], 4294967040  ;;  %v23_v0 = vlaneseq  ;;  %s468_s20 = smov 0   ;;  %v469_v1 = vmov 0.0   ;;  %v35_v8 = vld [vmem:[#allocation9] sm:$0xff]  ;;  %v36_v9 = vld [vmem:[#allocation9 + $0x8] sm:$0xff] }
  0x14   :  { %52 = sst [smem:[#allocation8]] %s468_s20  ;;  %39 = vst [vmem:[#allocation2] sm:$0xff] %v469_v1  ;;  %40 = vst [vmem:[#allocation2 + $0x8] sm:$0xff] %v469_v1  ;;  %v514_v10 = vmul.f32 0.00990099, %v35_v8  ;;  %s518_s0 = smov 0  }
  0x15   :  { %41 = vst [vmem:[#allocation3] sm:$0xff] %v469_v1  ;;  %42 = vst [vmem:[#allocation3 + $0x8] sm:$0xff] %v469_v1  ;;  %v499_v2 = vshrl.u32 %v23_v0, 7  ;;  %v27_v3 = vand.u32 127, %v23_v0  ;;  %v516_v11 = vmul.f32 0.00990099, %v36_v9 }
  0x16   :  { %43 = vst [vmem:[#allocation4] sm:$0xff] %v469_v1  ;;  %44 = vst [vmem:[#allocation4 + $0x8] sm:$0xff] %v469_v1 }
  0x17   :  { %45 = vst [vmem:[#allocation5] sm:$0xff] %v469_v1  ;;  %46 = vst [vmem:[#allocation5 + $0x8] sm:$0xff] %v469_v1  ;;  %v502_v4 = vadd.s32 8, %v499_v2  ;;  %v28_v5 = vand.u32 15, %v27_v3  ;;  %vm31_vm0 = vcmp.ge.s32.totalorder %v499_v2, 1 }
  0x18   :  { %47 = vst [vmem:[#allocation6] sm:$0xff] %v469_v1  ;;  %48 = vst [vmem:[#allocation6 + $0x8] sm:$0xff] %v469_v1 }
  0x19   :  { %49 = vst [vmem:[#allocation7] sm:$0xff] %v469_v1  ;;  %50 = vst [vmem:[#allocation7 + $0x8] sm:$0xff] %v469_v1  ;;  %vm30_vm1 = vcmp.lt.s32.totalorder %v502_v4, 15  ;;  %vm506_vm2 = vcmp.lt.s32.totalorder %v28_v5, 15  ;;  %vm510_vm3 = vcmp.ge.s32.totalorder %v28_v5, 1 }
  0x1a   :  { %37 = vst [vmem:[#allocation12] sm:$0xff] %v35_v8  ;;  %38 = vst [vmem:[#allocation12 + $0x8] sm:$0xff] %v36_v9 }
  0x1b LB: > { %s61_s21 = sld [smem:[#allocation8]]  ;;  %s463_s0 = sphi %s518_s0, %s60_s0  }
  0x21   : > { %p381_p8 = scmp.ne.s32.totalorder %s61_s21, 0 }
  0x22   : > { %v523_v12 = vld [vmem:[#allocation6] sm:$0xff] (!%p381_p8)  ;;  %v525_v13 = vld [vmem:[#allocation5] sm:$0xff] (!%p381_p8)  ;;  %s470_s22 = smov (!%p381_p8), 127   ;;  %v531_v14 = vld [vmem:[#allocation6 + $0x8] sm:$0xff] (!%p381_p8)  ;;  %vm82_vm4 = vcmp.lt.s32.totalorder (!%p381_p8), %v499_v2, 7  ;;  %vm111_vm5 = vcmp.lt.s32.totalorder (!%p381_p8), %v499_v2, 1 }
  0x23   : > { %65 = sbr.rel (%p381_p8) target bundleno = 784 (0x310), region = 20  ;;  %99 = vrot.lane.b32.xlu0 (!%p381_p8), %v523_v12, %s470_s22  ;;  %91 = vrot.lane.b32.xlu1 (!%p381_p8), %v525_v13, %s470_s22  ;;  %v533_v15 = vld [vmem:[#allocation5 + $0x8] sm:$0xff] (!%p381_p8)  ;;  %v539_v16 = vld [vmem:[#allocation4] sm:$0xff] (!%p381_p8)  ;;  %v541_v17 = vld [vmem:[#allocation4 + $0x8] sm:$0xff] (!%p381_p8)  ;;  %s471_s23 = smov (!%p381_p8), 1  }
  0x24   : > { %v80_v18 = vrot.slane (!%p381_p8), %v539_v16, 1  ;;  %v81_v19 = vrot.slane (!%p381_p8), %v541_v17, 1  ;;  %v548_v21 = vld [vmem:[#allocation7] sm:$0xff] (!%p381_p8)  ;;  %v550_v22 = vld [vmem:[#allocation7 + $0x8] sm:$0xff] (!%p381_p8)  ;;  %v571_v38 = vld [vmem:[#allocation2] sm:$0xff] (!%p381_p8)  ;;  %s320_s24 = sand.u32 (!%p381_p8), 7, %s463_s0 }
  0x25   : > { %v109_v25 = vrot.slane (!%p381_p8), %v548_v21, 7  ;;  %v110_v26 = vrot.slane (!%p381_p8), %v550_v22, 7  ;;  %v587_v55 = vld [vmem:[#allocation2 + $0x8] sm:$0xff] (!%p381_p8)  ;;  %v589_v56 = vld [vmem:[#allocation3] sm:$0xff] (!%p381_p8)  ;;  %p382_p9 = scmp.ne.s32.totalorder (!%p381_p8), %s320_s24, 7 }
  0x26   : > { %v83_v20 = vsel (!%p381_p8), %vm82_vm4, %v80_v18, %v81_v19  ;;  %v84_v23 = vsel (!%p381_p8), %vm82_vm4, %v81_v19, %v80_v18 }
  0x27   : > { %101 = vrot.lane.b32.xlu0 (!%p381_p8), %v531_v14, %s470_s22  ;;  %93 = vrot.lane.b32.xlu1 (!%p381_p8), %v533_v15, %s470_s22  ;;  %v87_v24 = vsub.f32 (!%p381_p8), %v539_v16, %v83_v20  ;;  %v86_v27 = vsel (!%p381_p8), %vm30_vm1, %v84_v23, 0.0  ;;  %v113_v31 = vsel (!%p381_p8), %vm111_vm5, %v110_v26, %v109_v25  ;;  %v112_v49 = vsel (!%p381_p8), %vm111_vm5, %v109_v25, %v110_v26  ;;  %v606_v20 = vld [vmem:[#allocation3 + $0x8] sm:$0xff] (!%p381_p8) }
  0x28   : > { %v88_v29 = vsub.f32 (!%p381_p8), %v541_v17, %v86_v27  ;;  %v114_v37 = vsel (!%p381_p8), %vm31_vm0, %v113_v31, 0.0 }
  0x29   : > { %v89_v28 = vadd.f32 (!%p381_p8), %v87_v24, %v525_v13 }
  0x2a   : > { %v90_v39 = vadd.f32 %v88_v29, %v533_v15  ;;  %s472_s28 = smov (!%p382_p9), 1  }
  0x95   : > { %v100_v30 = vpop.permute.xlu0 %99  ;;  %v92_v32 = vpop.permute.xlu1 %91 }
  0x96   : > { %v103_v33 = vsel %vm506_vm2, %v100_v30, 0.0  ;;  %v95_v34 = vsel %vm506_vm2, %v92_v32, 0.0 }
  0x97   : > { %v105_v35 = vsub.f32 %v523_v12, %v103_v33  ;;  %v97_v36 = vsub.f32 %v89_v28, %v95_v34 }
  0x99   : > { %v107_v40 = vsub.f32 %v105_v35, %v548_v21  ;;  %v102_v41 = vpop.permute.xlu0 %101  ;;  %v118_v42 = vmul.f32 0.01, %v97_v36  ;;  %v94_v43 = vpop.permute.xlu1 %93 }
  0x9a   : > { %v104_v44 = vsel %vm506_vm2, %v102_v41, 0.0  ;;  %v96_v45 = vsel %vm506_vm2, %v94_v43, 0.0 }
  0x9b   : > { %v106_v46 = vsub.f32 %v531_v14, %v104_v44  ;;  %v116_v47 = vadd.f32 %v114_v37, %v107_v40  ;;  %v150_v48 = vadd.f32 %v118_v42, %v571_v38  ;;  %v98_v50 = vsub.f32 %v90_v39, %v96_v45  ;;  %v628_v45 = vld [vmem:[#allocation12] sm:$0xff] }
  0x9c   : > { %v122_v57 = vrot.slane %v118_v42, 7 }
  0x9d   : > { %v108_v51 = vsub.f32 %v106_v46, %v550_v22  ;;  %v120_v52 = vmul.f32 0.01, %v116_v47  ;;  %v584_v53 = vmul.f32 2.0, %v150_v48  ;;  %v272_v54 = vsub.f32 %v150_v48, %v571_v38 }
  0x9e   : > { %v119_v58 = vmul.f32 0.01, %v98_v50 }
  0x9f   : > { %132 = vrot.lane.b32.xlu0 %v120_v52, %s471_s23  ;;  %v117_v59 = vadd.f32 %v112_v49, %v108_v51  ;;  %v274_v60 = vmul.f32 1.99, %v272_v54  ;;  %v176_v61 = vsub.f32 %v584_v53, %v571_v38  ;;  %v152_v1 = vadd.f32 %v120_v52, %v589_v56  ;;  %v635_v54 = vld [vmem:[#allocation12 + $0x8] sm:$0xff] }
  0xa0   : > { %v123_v62 = vrot.slane %v119_v58, 7  ;;  %v151_v63 = vadd.f32 %v119_v58, %v587_v55  ;;  %v129_v0 = vsel %vm30_vm1, %v119_v58, 0.0  ;;  %v140_v44 = vsel %vm506_vm2, %v120_v52, 0.0 }
  0xa1   : > { %v121_v3 = vmul.f32 0.01, %v117_v59  ;;  %v276_v5 = vadd.f32 %v274_v60, %v571_v38  ;;  %v611_v25 = vmul.f32 2.0, %v152_v1  ;;  %v280_v29 = vsub.f32 %v152_v1, %v589_v56 }
  0xa2   : > { %v599_v8 = vmul.f32 2.0, %v151_v63  ;;  %v273_v9 = vsub.f32 %v151_v63, %v587_v55  ;;  %v125_v18 = vsel %vm111_vm5, %v123_v62, %v122_v57  ;;  %v124_v19 = vsel %vm111_vm5, %v122_v57, %v123_v62 }
  0xa3   : > { %134 = vrot.lane.b32.xlu1 %v121_v3, %s471_s23  ;;  %278 = vst [vmem:[#allocation2] sm:$0xff] %v276_v5  ;;  %v126_v23 = vsel %vm31_vm0, %v125_v18, 0.0  ;;  %v131_v24 = vsub.f32 %v124_v19, %v129_v0  ;;  %v182_v30 = vsub.f32 %v611_v25, %v589_v56  ;;  %v153_v31 = vadd.f32 %v121_v3, %v606_v20 }
  0xa4   : > { %v275_v26 = vmul.f32 1.99, %v273_v9  ;;  %v130_v27 = vsub.f32 %v126_v23, %v118_v42  ;;  %v177_v28 = vsub.f32 %v599_v8, %v587_v55  ;;  %v282_v33 = vmul.f32 1.99, %v280_v29 }
  0xa5   : > { %v181_v34 = vmul.f32 2.0, %v153_v31  ;;  %v281_v35 = vsub.f32 %v153_v31, %v606_v20  ;;  %v141_v51 = vsel %vm506_vm2, %v121_v3, 0.0 }
  0xa6   : > { %v277_v32 = vadd.f32 %v275_v26, %v587_v55  ;;  %v284_v36 = vadd.f32 %v282_v33, %v589_v56 }
  0xa7   : > { %v183_v37 = vsub.f32 %v181_v34, %v606_v20  ;;  %v283_v39 = vmul.f32 1.99, %v281_v35 }
  0xa8   : > { %279 = vst [vmem:[#allocation2 + $0x8] sm:$0xff] %v277_v32  ;;  %286 = vst [vmem:[#allocation3] sm:$0xff] %v284_v36 }
  0xa9   : > { %v285_v40 = vadd.f32 %v283_v39, %v606_v20 }
  0xab   : > { %287 = vst [vmem:[#allocation3 + $0x8] sm:$0xff] %v285_v40 }
 0x111   : > { %v133_v41 = vpop.permute.xlu0 %132 }
 0x112   : > { %v136_v42 = vsel %vm510_vm3, %v133_v41, 0.0 }
 0x113   : > { %v138_v43 = vadd.f32 %v136_v42, %v130_v27 }
 0x115   : > { %v142_v46 = vsub.f32 %v138_v43, %v140_v44  ;;  %v135_v47 = vpop.permute.xlu1 %134 }
 0x116   : > { %v137_v48 = vsel %vm510_vm3, %v135_v47, 0.0 }
 0x117   : > { %v144_v49 = vsub.f32 %v628_v45, %v142_v46  ;;  %v139_v50 = vadd.f32 %v137_v48, %v131_v24 }
 0x119   : > { %v146_v55 = vmul.f32 0.990099, %v144_v49  ;;  %v143_v56 = vsub.f32 %v139_v50, %v141_v51 }
 0x11b   : > { %v148_v57 = vadd.f32 %v146_v55, %v514_v10  ;;  %v145_v52 = vsub.f32 %v635_v54, %v143_v56 }
 0x11d   : > { %v154_v58 = vmul.f32 2.0, %v148_v57  ;;  %v264_v59 = vsub.f32 %v148_v57, %v628_v45  ;;  %v147_v60 = vmul.f32 0.990099, %v145_v52 }
 0x11f   : > { %v266_v62 = vmul.f32 1.99, %v264_v59  ;;  %v149_v63 = vadd.f32 %v147_v60, %v516_v11  ;;  %v156_v0 = vsub.f32 %v154_v58, %v628_v45 }
 0x121   : > { %v643_v1 = vadd.f32 %v266_v62, %v628_v45  ;;  %v155_v3 = vmul.f32 2.0, %v149_v63  ;;  %v265_v5 = vsub.f32 %v149_v63, %v635_v54  ;;  %166 = vrot.lane.b32.xlu0 %v156_v0, %s470_s22  ;;  %v158_v19 = vrot.slane %v156_v0, 1 }
 0x123   : > { %270 = vst [vmem:[#allocation12] sm:$0xff] %v643_v1  ;;  %v267_v8 = vmul.f32 1.99, %v265_v5  ;;  %v157_v9 = vsub.f32 %v155_v3, %v635_v54 }
 0x125   : > { %v650_v18 = vadd.f32 %v267_v8, %v635_v54  ;;  %168 = vrot.lane.b32.xlu1 %v157_v9, %s470_s22  ;;  %v159_v20 = vrot.slane %v157_v9, 1 }
 0x127   : > { %271 = vst [vmem:[#allocation12 + $0x8] sm:$0xff] %v650_v18  ;;  %v160_v23 = vsel %vm82_vm4, %v158_v19, %v159_v20  ;;  %v161_v24 = vsel %vm82_vm4, %v159_v20, %v158_v19 }
 0x128   : > { %v162_v25 = vsub.f32 %v160_v23, %v156_v0  ;;  %v163_v26 = vsub.f32 %v161_v24, %v157_v9 }
 0x12a   : > { %v178_v27 = vsub.f32 %v162_v25, %v176_v61  ;;  %v165_v29 = vsel %vm30_vm1, %v163_v26, 0.0 }
 0x12b   : > { %v179_v31 = vsub.f32 %v165_v29, %v177_v28 }
 0x12c   : > { %194 = vrot.lane.b32.xlu0 %v178_v27, %s471_s23  ;;  %v186_v61 = vrot.slane %v178_v27, 7 }
 0x12d   : > { %196 = vrot.lane.b32.xlu1 %v179_v31, %s471_s23  ;;  %v187_v28 = vrot.slane %v179_v31, 7 }
 0x12f   : > { %v189_v41 = vsel %vm111_vm5, %v187_v28, %v186_v61  ;;  %v188_v49 = vsel %vm111_vm5, %v186_v61, %v187_v28 }
 0x130   : > { %v193_v57 = vsub.f32 %v179_v31, %v188_v49 }
 0x132   : > { %v219_v3 = vmul.f32 1.3888888, %v193_v57 }
 0x193   : > { %v167_v32 = vpop.permute.xlu0 %166 }
 0x194   : > { %v170_v33 = vsub.f32 %v167_v32, %v156_v0 }
 0x196   : > { %v172_v34 = vsel %vm506_vm2, %v170_v33, 0.0 }
 0x197   : > { %v184_v35 = vsub.f32 %v172_v34, %v182_v30  ;;  %v169_v36 = vpop.permute.xlu1 %168  ;;  %v190_v30 = vsel %vm31_vm0, %v189_v41, 0.0 }
 0x198   : > { %v171_v39 = vsub.f32 %v169_v36, %v157_v9  ;;  %v192_v47 = vsub.f32 %v178_v27, %v190_v30 }
 0x199   : > { %202 = vrot.lane.b32.xlu0 %v184_v35, %s471_s23  ;;  %v210_v46 = vrot.slane %v184_v35, 1 }
 0x19a   : > { %v173_v38 = vsel %vm506_vm2, %v171_v39, 0.0  ;;  %v218_v56 = vmul.f32 1.3888888, %v192_v47 }
 0x19b   : > { %v185_v53 = vsub.f32 %v173_v38, %v183_v37 }
 0x19c   : > { %v220_v0 = vadd.f32 %v218_v56, %v539_v16 }
 0x19d   : > { %204 = vrot.lane.b32.xlu1 %v185_v53, %s471_s23  ;;  %v211_v44 = vrot.slane %v185_v53, 1 }
 0x19e   : > { %v195_v40 = vpop.permute.xlu0 %194  ;;  %v234_v26 = vmul.f32 %v220_v0, %v220_v0 }
 0x19f   : > { %v198_v42 = vsub.f32 %v178_v27, %v195_v40  ;;  %v197_v43 = vpop.permute.xlu1 %196  ;;  %v212_v50 = vsel %vm82_vm4, %v210_v46, %v211_v44  ;;  %v213_v51 = vsel %vm82_vm4, %v211_v44, %v210_v46  ;;  %v221_v27 = vadd.f32 %v219_v3, %v541_v17 }
 0x1a0   : > { %v199_v48 = vsub.f32 %v179_v31, %v197_v43  ;;  %v214_v58 = vsub.f32 %v212_v50, %v184_v35  ;;  %v215_v59 = vsub.f32 %v213_v51, %v185_v53 }
 0x1a1   : > { %v200_v37 = vsel %vm510_vm3, %v198_v42, 0.0  ;;  %v235_v61 = vmul.f32 %v221_v27, %v221_v27 }
 0x1a2   : > { %v222_v55 = vmul.f32 1.3888888, %v200_v37  ;;  %v201_v52 = vsel %vm510_vm3, %v199_v48, 0.0  ;;  %v230_v8 = vmul.f32 1.3888888, %v214_v58  ;;  %v217_v19 = vsel %vm30_vm1, %v215_v59, 0.0 }
 0x1a3   : > { %v223_v62 = vmul.f32 1.3888888, %v201_v52  ;;  %v231_v31 = vmul.f32 1.3888888, %v217_v19 }
 0x1a4   : > { %v224_v60 = vadd.f32 %v222_v55, %v525_v13  ;;  %v232_v32 = vadd.f32 %v230_v8, %v548_v21 }
 0x1a5   : > { %v225_v23 = vadd.f32 %v223_v62, %v533_v15  ;;  %v233_v28 = vadd.f32 %v231_v31, %v550_v22 }
 0x1a6   : > { %v236_v20 = vmul.f32 %v224_v60, %v224_v60  ;;  %v244_v40 = vmul.f32 %v232_v32, %v232_v32 }
 0x1a7   : > { %v237_v36 = vmul.f32 %v225_v23, %v225_v23  ;;  %v245_v47 = vmul.f32 %v233_v28, %v233_v28 }
 0x1a9   : > { %v239_v30 = vadd.f32 %v237_v36, %v235_v61 }
 0x20b   : > { %v203_v63 = vpop.permute.xlu0 %202 }
 0x20c   : > { %v206_v5 = vsel %vm510_vm3, %v203_v63, 0.0 }
 0x20d   : > { %v208_v9 = vsub.f32 %v184_v35, %v206_v5  ;;  %v238_v35 = vadd.f32 %v236_v20, %v234_v26 }
 0x20f   : > { %v226_v24 = vmul.f32 1.3888888, %v208_v9  ;;  %v205_v25 = vpop.permute.xlu1 %204 }
 0x210   : > { %v207_v29 = vsel %vm510_vm3, %v205_v25, 0.0 }
 0x211   : > { %v228_v33 = vadd.f32 %v226_v24, %v523_v12  ;;  %v209_v34 = vsub.f32 %v185_v53, %v207_v29 }
 0x213   : > { %v240_v39 = vmul.f32 %v228_v33, %v228_v33  ;;  %v227_v38 = vmul.f32 1.3888888, %v209_v34 }
 0x215   : > { %v242_v41 = vadd.f32 %v240_v39, %v238_v35  ;;  %v229_v42 = vadd.f32 %v227_v38, %v531_v14 }
 0x217   : > { %v246_v43 = vadd.f32 %v244_v40, %v242_v41  ;;  %v241_v44 = vmul.f32 %v229_v42, %v229_v42 }
 0x219   : > { %v248_v46 = vadd.f32 1e-30, %v246_v43  ;;  %v243_v37 = vadd.f32 %v241_v44, %v239_v30 }
 0x21b   : > { %405 = vrsqrt.f32 %v248_v46  ;;  %v247_v48 = vadd.f32 %v245_v47, %v243_v37 }
 0x21d   : > { %v249_v53 = vadd.f32 1e-30, %v247_v48 }
 0x21f   : > { %407 = vrsqrt.f32 %v249_v53 }
 0x225   : > { %v406_v49 = vpop.eup %405 }
 0x226   : > { %v252_v50 = vmul.f32 0.1, %v406_v49 }
 0x228   : > { %v254_v51 = vmin.f32 %v252_v50, 1.0 }
 0x229   : > { %v408_v55 = vpop.eup %407 }
 0x22a   : > { %v256_v56 = vmul.f32 %v254_v51, %v220_v0  ;;  %v258_v57 = vmul.f32 %v254_v51, %v224_v60  ;;  %v260_v52 = vmul.f32 %v254_v51, %v228_v33  ;;  %v262_v58 = vmul.f32 %v254_v51, %v232_v32 }
 0x22b   : > { %v253_v59 = vmul.f32 0.1, %v408_v55 }
 0x22c   : > { %v288_v62 = vsub.f32 %v256_v56, %v539_v16  ;;  %v296_v63 = vsub.f32 %v258_v57, %v525_v13  ;;  %v304_v3 = vsub.f32 %v260_v52, %v523_v12  ;;  %v312_v5 = vsub.f32 %v262_v58, %v548_v21 }
 0x22d   : > { %v255_v8 = vmin.f32 %v253_v59, 1.0 }
 0x22e   : > { %v290_v9 = vmul.f32 1.99, %v288_v62  ;;  %v298_v19 = vmul.f32 1.99, %v296_v63  ;;  %v306_v20 = vmul.f32 1.99, %v304_v3 }
 0x22f   : > { %v314_v24 = vmul.f32 1.99, %v312_v5  ;;  %v257_v25 = vmul.f32 %v255_v8, %v221_v27  ;;  %v259_v26 = vmul.f32 %v255_v8, %v225_v23  ;;  %v261_v0 = vmul.f32 %v255_v8, %v229_v42 }
 0x230   : > { %v292_v60 = vadd.f32 %v290_v9, %v539_v16  ;;  %v300_v29 = vadd.f32 %v298_v19, %v525_v13  ;;  %v308_v31 = vadd.f32 %v306_v20, %v523_v12  ;;  %v263_v32 = vmul.f32 %v255_v8, %v233_v28 }
 0x231   : > { %v316_v33 = vadd.f32 %v314_v24, %v548_v21  ;;  %v289_v34 = vsub.f32 %v257_v25, %v541_v17  ;;  %v297_v35 = vsub.f32 %v259_v26, %v533_v15  ;;  %v305_v36 = vsub.f32 %v261_v0, %v531_v14 }
 0x232   : > { %294 = vst [vmem:[#allocation4] sm:$0xff] %v292_v60  ;;  %302 = vst [vmem:[#allocation5] sm:$0xff] %v300_v29  ;;  %v313_v23 = vsub.f32 %v263_v32, %v550_v22  ;;  %324 = sbr.rel (%p382_p9) target bundleno = 784 (0x310), region = 24  ;;  %v325_v28 = vsub.f32 (!%p382_p9), %v628_v45, %v643_v1 }
 0x233   : > { %310 = vst [vmem:[#allocation6] sm:$0xff] %v308_v31  ;;  %318 = vst [vmem:[#allocation7] sm:$0xff] %v316_v33  ;;  %v291_v16 = vmul.f32 1.99, %v289_v34  ;;  %v299_v27 = vmul.f32 1.99, %v297_v35 }
 0x234   : > { %v307_v13 = vmul.f32 1.99, %v305_v36  ;;  %v315_v39 = vmul.f32 1.99, %v313_v23  ;;  %v327_v40 = vmul.f32 (!%p382_p9), %v325_v28, %v325_v28 }
 0x235   : > { %v293_v12 = vadd.f32 %v291_v16, %v541_v17  ;;  %v301_v21 = vadd.f32 %v299_v27, %v533_v15  ;;  %v326_v17 = vsub.f32 (!%p382_p9), %v635_v54, %v650_v18  ;;  %v339_v15 = vadd.f32 (!%p382_p9), 1e-12, %v643_v1 }
 0x236   : > { %v309_v38 = vadd.f32 %v307_v13, %v531_v14  ;;  %v317_v61 = vadd.f32 %v315_v39, %v550_v22  ;;  %v340_v14 = vadd.f32 (!%p382_p9), 1e-12, %v650_v18 }
 0x237   : > { %295 = vst [vmem:[#allocation4 + $0x8] sm:$0xff] %v293_v12  ;;  %303 = vst [vmem:[#allocation5 + $0x8] sm:$0xff] %v301_v21  ;;  %v328_v22 = vmul.f32 (!%p382_p9), %v326_v17, %v326_v17  ;;  %v341_v41 = vmul.f32 (!%p382_p9), %v339_v15, %v339_v15 }
 0x238   : > { %311 = vst [vmem:[#allocation6 + $0x8] sm:$0xff] %v309_v38  ;;  %319 = vst [vmem:[#allocation7 + $0x8] sm:$0xff] %v317_v61  ;;  %v342_v42 = vmul.f32 (!%p382_p9), %v340_v14, %v340_v14 }
 0x239   : > { %v329_v30 = vadd.f32 %v328_v22, %v327_v40 }
 0x23a   : > { %v343_v43 = vadd.f32 %v342_v42, %v341_v41 }
 0x23b   : > { %330 = vadd.xlane.f32.xlu0 %v329_v30 }
 0x23f   : > { %344 = vadd.xlane.f32.xlu0 %v343_v43 }
 0x2c8   : > { %v331_v44 = vpop.xlane.xlu0 %330 }
 0x2c9   : > { %v332_v46 = vrot.slane %v331_v44, 4 }
 0x2cb   : > { %v333_v47 = vadd.f32 %v332_v46, %v331_v44 }
 0x2cc   : > { %v345_v37 = vpop.xlane.xlu0 %344 }
 0x2cd   : > { %v334_v45 = vrot.slane %v333_v47, 2  ;;  %v346_v48 = vrot.slane %v345_v37, 4 }
 0x2cf   : > { %v347_v53 = vadd.f32 %v346_v48, %v345_v37  ;;  %v335_v54 = vadd.f32 %v334_v45, %v333_v47 }
 0x2d1   : > { %v348_v49 = vrot.slane %v347_v53, 2  ;;  %v336_v1 = vrot.slane %v335_v54, 1 }
 0x2d3   : > { %v349_v50 = vadd.f32 %v348_v49, %v347_v53  ;;  %v337_v18 = vadd.f32 %v336_v1, %v335_v54 }
 0x2d5   : > { %383 = vpush %v337_v18  ;;  %v350_v51 = vrot.slane %v349_v50, 1 }
 0x2d7   : > { %v351_v55 = vadd.f32 %v350_v51, %v349_v50 }
 0x2d9   : > { %385 = vpush %v351_v55 }
 0x306   : > { %s384_s25 = spop %383 }
 0x30a   : > { %s386_s26 = spop %385 }
 0x30b   : > { %s353_s27 = smul.f32 1e-10, %s386_s26 }
 0x30d   : > { %p354_p10 = scmp.lt.f32.partialorder %s384_s25, %s353_s27 }
 0x30f   : > { %387 = sst [smem:[#allocation8]] (%p354_p10), %s472_s28 }
 0x310 PF: > { %s60_s0 = sadd.s32 1, %s463_s0  }
 0x311   : > { %p57_p11 = scmp.ge.s32.totalorder %s60_s0, 100  }
 0x312   :  { %s473_s29 = smov (%p57_p11), [#allocation12]  }
 0x313   :  { %59 = sbr.rel (!%p57_p11) target bundleno = 27 (0x1b), region = 48  ;;  %s364_s30 = sshll.u32 (%p57_p11), %s473_s29, 4  ;;  %s365_s30 = int_to_ptr.vmem [resolvable:$true] %s364_s30 }
 0x314   :  { %s431_s2 = scalar_lea.vmem (%p57_p11), %s365_s30, 256  ;;  %p436_p13 = scmp.lt.s32.totalorder (%p57_p11), %s365_s30, %s365_s30 }
 0x315   :  { %p432_p12 = scmp.ne.s32.totalorder (%p57_p11), %s365_s30, %s431_s2  ;;  %p437_p0 = scmp.lt.s32.totalorder (%p57_p11), %s431_s2, %s431_s2 }
 0x317   :  { %p438_p1 = por (%p57_p11), %p437_p0, %p436_p13 }
 0x319   :  { %p439_p2 = pnand (%p57_p11), %p438_p1, %p432_p12 }
 0x31b   :  { %442 = shalt.err (!%p439_p2)
}
 0x31c   :  { %s443_s5 = scalar_lea.hbm %s743_s1, 256 }
 0x31d   :  { %p444_p3 = scmp.ne.s32.totalorder %s743_s1, %s443_s5  ;;  %p447_p4 = scmp.lt.u32.totalorder %s443_s5, %s743_s1 }
 0x31f   :  { %p449_p5 = pnand %p447_p4, %p444_p3 }
 0x321   :  { %452 = shalt.err (!%p449_p5)
}
 0x322   :  { %370 = dma.vmem_to_hbm [thread:$0]  %s365_s30, 256, %s743_s1, [#allocation11], %s466_s16, %s466_s16, %s467_s17  }
 0x323   :  { %459 = dma.done.wait [#allocation11], 256  }
 0x324   :  { %460 = vsyncadd [#allocation11], 4294967040 }
 0x325   :  { %374 = vsyncpa [#allocation10], 1 }
 0x326   :  { %375 = vsyncpa [#allocation11], 1 }

</bundles_post_ra>
